<compile_context>
chip_gen: v7x
topology: tpu7x:2x2x1
jax: 0.10.0
libtpu: 0.0.40
codegen_flags: <defaults>
</compile_context>

<pallas_src>
import functools
import math

import jax
import jax.numpy as jnp
from jax import lax
from jax.experimental import pallas as pl
from jax.experimental.pallas import tpu as pltpu

NODES_PER_LAYER = 128
NUM_HIDDEN_LAYERS = 2


def _mlp_kernel(x_ref, w1_ref, b1_ref, w2_ref, b2_ref, w3_ref, b3_ref, o_ref,
                *, row_chunk, n_full, tail, unroll):
    # Weights/biases are small and fully VMEM-resident (constant index_map); load once.
    w1 = w1_ref[...]
    b1 = b1_ref[...]
    w2 = w2_ref[...]
    b2 = b2_ref[...]
    w3 = w3_ref[...]
    b3 = b3_ref[...]

    def process(r0, rows):
        xs = x_ref[pl.ds(r0, rows), :]
        # Layer 1: Linear + ReLU (bf16 operands, f32 MXU accumulation).
        h = jnp.dot(xs, w1, preferred_element_type=jnp.float32)
        h = jnp.maximum(h + b1, 0.0).astype(w2.dtype)
        # Layer 2: Linear + ReLU.
        h = jnp.dot(h, w2, preferred_element_type=jnp.float32)
        h = jnp.maximum(h + b2, 0.0).astype(w3.dtype)
        # Output layer: Linear (no activation), narrow (out_dim) columns -> small writeback.
        o = jnp.dot(h, w3, preferred_element_type=jnp.float32) + b3
        o_ref[pl.ds(r0, rows), :] = o.astype(o_ref.dtype)

    if n_full == 1 and tail == 0:
        process(0, row_chunk)
    else:
        def body(c, carry):
            process(pl.multiple_of(c * row_chunk, row_chunk), row_chunk)
            return carry

        # Sub-chunking bounds the live (row_chunk, 128) f32 activation so it stays in
        # vregs rather than spilling the whole batch tile between layers.
        lax.fori_loop(0, n_full, body, None, unroll=unroll)
        if tail > 0:
            process(n_full * row_chunk, tail)


def _round_up(n, m):
    return -(-n // m) * m


@functools.partial(jax.jit, static_argnames=("batch_tile", "row_chunk", "compute_dtype"))
def ann_forward(x, w1, b1, w2, b2, w3, b3, *, batch_tile=2048, row_chunk=128,
                compute_dtype=jnp.bfloat16):
    B, in_dim = x.shape
    hid = w1.shape[1]
    out_dim = w3.shape[1]

    # Batch tile: multiple of 16 (bf16 sublane packing), big enough to amortize the
    # per-grid-step fixed cost.
    bt = min(batch_tile, _round_up(B, 16))
    bt = max(16, (bt // 16) * 16)
    # If the whole batch would run as a single grid step but there is enough work for two,
    # split it so dimension_semantics=("parallel",) can shard across v7x's 2 TensorCores.
    if B > 16 and _round_up(B, bt) == bt:
        bt = max(16, _round_up(-(-B // 2), 16))
    Bp = _round_up(B, bt)
    if Bp != B:
        x = jnp.pad(x, ((0, Bp - B), (0, 0)))
    grid = (Bp // bt,)

    # In-kernel sub-chunking of each batch tile (uneven tail handled as a second static pass).
    rc = min(row_chunk, bt)
    n_full = bt // rc
    tail = bt % rc
    unroll = n_full <= 16  # keep compile size bounded for very large tiles

    # bf16 activations/weights, f32 biases & accumulation.
    x = x.astype(compute_dtype)
    w1 = w1.astype(compute_dtype)
    w2 = w2.astype(compute_dtype)
    w3 = w3.astype(compute_dtype)
    b1 = b1.astype(jnp.float32)
    b2 = b2.astype(jnp.float32)
    b3 = b3.astype(jnp.float32)

    kernel = functools.partial(_mlp_kernel, row_chunk=rc, n_full=n_full, tail=tail,
                               unroll=unroll)
    resident = lambda shape: pl.BlockSpec(shape, lambda i: (0, 0))

    out = pl.pallas_call(
        kernel,
        out_shape=jax.ShapeDtypeStruct((Bp, out_dim), jnp.float32),
        grid=grid,
        in_specs=[
            pl.BlockSpec((bt, in_dim), lambda i: (i, 0)),
            resident((in_dim, hid)),
            resident((1, hid)),
            resident((hid, hid)),
            resident((1, hid)),
            resident((hid, out_dim)),
            resident((1, out_dim)),
        ],
        out_specs=pl.BlockSpec((bt, out_dim), lambda i: (i, 0)),
        compiler_params=pltpu.CompilerParams(
            dimension_semantics=("parallel",),
        ),
    )(x, w1, b1, w2, b2, w3, b3)

    # Only slice when the batch was actually padded (avoids an extra copy otherwise).
    if Bp != B:
        out = out[:B]
    return out


def init_params(key, input_size, num_hidden_layers, nodes_per_layer, output_size,
                *, zero_weights=True):
    """zero_weights=True mirrors the PyTorch __init__ (weights zeroed, biases default init).
    zero_weights=False uses PyTorch's default Linear init so the matmul path is exercised."""
    dims = [input_size] + [nodes_per_layer] * num_hidden_layers + [output_size]
    params = []
    for fan_in, fan_out in zip(dims[:-1], dims[1:]):
        key, wk, bk = jax.random.split(key, 3)
        bound = 1.0 / math.sqrt(float(fan_in))
        if zero_weights:
            w = jnp.zeros((fan_in, fan_out), dtype=jnp.float32)
        else:
            w = jax.random.uniform(wk, (fan_in, fan_out), jnp.float32, -bound, bound)
        b = jax.random.uniform(bk, (1, fan_out), jnp.float32, -bound, bound)
        params.append((w, b))
    return params


def reference_forward(x, params):
    h = x
    for w, b in params[:-1]:
        h = jnp.maximum(h @ w + b, 0.0)
    w, b = params[-1]
    return h @ w + b


if __name__ == "__main__":
    key = jax.random.PRNGKey(0)
    batch = 16
    input_size = 32
    output_size = 8

    # Module-faithful (zero weights) and nonzero-weight validation cases.
    params_zero = init_params(key, input_size, NUM_HIDDEN_LAYERS, NODES_PER_LAYER,
                              output_size, zero_weights=True)
    params_rand = init_params(key, input_size, NUM_HIDDEN_LAYERS, NODES_PER_LAYER,
                              output_size, zero_weights=False)

    key, xk = jax.random.split(key)
    x = jax.random.normal(xk, (batch, input_size), dtype=jnp.float32)

    for params, tol in ((params_zero, 1e-5), (params_rand, 5e-2)):
        (w1, b1), (w2, b2), (w3, b3) = params
        out = ann_forward(x, w1, b1, w2, b2, w3, b3)
        out = jax.block_until_ready(out)
        ref = reference_forward(x, params)
        assert out.shape == (batch, output_size)
        assert bool(jnp.allclose(out, ref, atol=tol, rtol=tol)), "mismatch vs reference"

    # Exercise the multi-step grid + uneven-tail path (>=2 grid steps, padded batch).
    key, xk2 = jax.random.split(key)
    x2 = jax.random.normal(xk2, (300, input_size), dtype=jnp.float32)
    (w1, b1), (w2, b2), (w3, b3) = params_rand
    out2 = jax.block_until_ready(ann_forward(x2, w1, b1, w2, b2, w3, b3))
    ref2 = reference_forward(x2, params_rand)
    assert out2.shape == (300, output_size)
    assert bool(jnp.allclose(out2, ref2, atol=5e-2, rtol=5e-2)), "mismatch vs reference (B=300)"

    print("KERNEL_OK")
</pallas_src>

<mosaic_0001>
module attributes {stable_mosaic.version = 11 : i64} {
  func.func @_mlp_kernel(%arg0: i32, %arg1: memref<16x32xbf16, #tpu.memory_space<vmem>>, %arg2: memref<32x128xbf16, #tpu.memory_space<vmem>>, %arg3: memref<1x128xf32, #tpu.memory_space<vmem>>, %arg4: memref<128x128xbf16, #tpu.memory_space<vmem>>, %arg5: memref<1x128xf32, #tpu.memory_space<vmem>>, %arg6: memref<128x8xbf16, #tpu.memory_space<vmem>>, %arg7: memref<1x8xf32, #tpu.memory_space<vmem>>, %arg8: memref<16x8xf32, #tpu.memory_space<vmem>>) attributes {dimension_semantics = [#tpu.dimension_semantics<parallel>], iteration_bounds = array<i64: 1>, scalar_prefetch = 0 : i64, scratch_operands = 0 : i64, tpu.core_type = #tpu.core_type<tc>, window_params = [{transform_indices = @transform_0, window_bounds = array<i64: 16, 32>}, {pipeline_mode = #tpu.pipeline_mode<synchronous>, transform_indices = @transform_1, window_bounds = array<i64: 32, 128>}, {pipeline_mode = #tpu.pipeline_mode<synchronous>, transform_indices = @transform_2, window_bounds = array<i64: 1, 128>}, {pipeline_mode = #tpu.pipeline_mode<synchronous>, transform_indices = @transform_3, window_bounds = array<i64: 128, 128>}, {pipeline_mode = #tpu.pipeline_mode<synchronous>, transform_indices = @transform_4, window_bounds = array<i64: 1, 128>}, {pipeline_mode = #tpu.pipeline_mode<synchronous>, transform_indices = @transform_5, window_bounds = array<i64: 128, 8>}, {pipeline_mode = #tpu.pipeline_mode<synchronous>, transform_indices = @transform_6, window_bounds = array<i64: 1, 8>}, {transform_indices = @transform_7, window_bounds = array<i64: 16, 8>}]} {
    %c0 = arith.constant 0 : index
    %c0_0 = arith.constant 0 : index
    %0 = vector.load %arg2[%c0, %c0_0] : memref<32x128xbf16, #tpu.memory_space<vmem>>, vector<32x128xbf16>
    %c0_1 = arith.constant 0 : index
    %c0_2 = arith.constant 0 : index
    %1 = vector.load %arg3[%c0_1, %c0_2] : memref<1x128xf32, #tpu.memory_space<vmem>>, vector<1x128xf32>
    %c0_3 = arith.constant 0 : index
    %c0_4 = arith.constant 0 : index
    %2 = vector.load %arg4[%c0_3, %c0_4] : memref<128x128xbf16, #tpu.memory_space<vmem>>, vector<128x128xbf16>
    %c0_5 = arith.constant 0 : index
    %c0_6 = arith.constant 0 : index
    %3 = vector.load %arg5[%c0_5, %c0_6] : memref<1x128xf32, #tpu.memory_space<vmem>>, vector<1x128xf32>
    %c0_7 = arith.constant 0 : index
    %c0_8 = arith.constant 0 : index
    %4 = vector.load %arg6[%c0_7, %c0_8] : memref<128x8xbf16, #tpu.memory_space<vmem>>, vector<128x8xbf16>
    %c0_9 = arith.constant 0 : index
    %c0_10 = arith.constant 0 : index
    %5 = vector.load %arg7[%c0_9, %c0_10] : memref<1x8xf32, #tpu.memory_space<vmem>>, vector<1x8xf32>
    %c0_11 = arith.constant 0 : index
    %c0_12 = arith.constant 0 : index
    %6 = vector.load %arg1[%c0_11, %c0_12] : memref<16x32xbf16, #tpu.memory_space<vmem>>, vector<16x32xbf16>
    %cst = arith.constant dense<0.000000e+00> : vector<16x128xf32>
    %7 = tpu.matmul %6, %0, %cst {dimension_numbers = #tpu.dot_dimension_numbers<[1], [0], [0], [1], [0, 0, 1, 1], [], []>} : vector<16x32xbf16>, vector<32x128xbf16>, vector<16x128xf32> -> vector<16x128xf32>
    %8 = vector.broadcast %1 : vector<1x128xf32> to vector<16x128xf32>
    %9 = arith.addf %7, %8 : vector<16x128xf32>
    %cst_13 = arith.constant 0.000000e+00 : f32
    %10 = vector.broadcast %cst_13 : f32 to vector<16x128xf32>
    %11 = arith.maximumf %9, %10 : vector<16x128xf32>
    %12 = arith.truncf %11 : vector<16x128xf32> to vector<16x128xbf16>
    %cst_14 = arith.constant dense<0.000000e+00> : vector<16x128xf32>
    %13 = tpu.matmul %12, %2, %cst_14 {dimension_numbers = #tpu.dot_dimension_numbers<[1], [0], [0], [1], [0, 0, 1, 1], [], []>} : vector<16x128xbf16>, vector<128x128xbf16>, vector<16x128xf32> -> vector<16x128xf32>
    %14 = vector.broadcast %3 : vector<1x128xf32> to vector<16x128xf32>
    %15 = arith.addf %13, %14 : vector<16x128xf32>
    %cst_15 = arith.constant 0.000000e+00 : f32
    %16 = vector.broadcast %cst_15 : f32 to vector<16x128xf32>
    %17 = arith.maximumf %15, %16 : vector<16x128xf32>
    %18 = arith.truncf %17 : vector<16x128xf32> to vector<16x128xbf16>
    %cst_16 = arith.constant dense<0.000000e+00> : vector<16x8xf32>
    %19 = tpu.matmul %18, %4, %cst_16 {dimension_numbers = #tpu.dot_dimension_numbers<[1], [0], [0], [1], [0, 0, 1, 1], [], []>} : vector<16x128xbf16>, vector<128x8xbf16>, vector<16x8xf32> -> vector<16x8xf32>
    %20 = vector.broadcast %5 : vector<1x8xf32> to vector<16x8xf32>
    %21 = arith.addf %19, %20 : vector<16x8xf32>
    %c0_17 = arith.constant 0 : index
    %c0_18 = arith.constant 0 : index
    %22 = vector.load %arg8[%c0_17, %c0_18] : memref<16x8xf32, #tpu.memory_space<vmem>>, vector<16x8xf32>
    tpu.vector_store %arg8[%c0_17, %c0_18], %21 {strides = array<i32>} : memref<16x8xf32, #tpu.memory_space<vmem>>, vector<16x8xf32>,
    return
  }
  func.func @transform_0(%arg0: i32) -> (i32, i32) {
    %c0_i32 = arith.constant 0 : i32
    %c0_i32_0 = arith.constant 0 : i32
    return %arg0, %c0_i32 : i32, i32
  }
  func.func @transform_1(%arg0: i32) -> (i32, i32) {
    %c0_i32 = arith.constant 0 : i32
    %c0_i32_0 = arith.constant 0 : i32
    %c0_i32_1 = arith.constant 0 : i32
    return %c0_i32, %c0_i32_0 : i32, i32
  }
  func.func @transform_2(%arg0: i32) -> (i32, i32) {
    %c0_i32 = arith.constant 0 : i32
    %c0_i32_0 = arith.constant 0 : i32
    %c0_i32_1 = arith.constant 0 : i32
    return %c0_i32, %c0_i32_0 : i32, i32
  }
  func.func @transform_3(%arg0: i32) -> (i32, i32) {
    %c0_i32 = arith.constant 0 : i32
    %c0_i32_0 = arith.constant 0 : i32
    %c0_i32_1 = arith.constant 0 : i32
    return %c0_i32, %c0_i32_0 : i32, i32
  }
  func.func @transform_4(%arg0: i32) -> (i32, i32) {
    %c0_i32 = arith.constant 0 : i32
    %c0_i32_0 = arith.constant 0 : i32
    %c0_i32_1 = arith.constant 0 : i32
    return %c0_i32, %c0_i32_0 : i32, i32
  }
  func.func @transform_5(%arg0: i32) -> (i32, i32) {
    %c0_i32 = arith.constant 0 : i32
    %c0_i32_0 = arith.constant 0 : i32
    %c0_i32_1 = arith.constant 0 : i32
    return %c0_i32, %c0_i32_0 : i32, i32
  }
  func.func @transform_6(%arg0: i32) -> (i32, i32) {
    %c0_i32 = arith.constant 0 : i32
    %c0_i32_0 = arith.constant 0 : i32
    %c0_i32_1 = arith.constant 0 : i32
    return %c0_i32, %c0_i32_0 : i32, i32
  }
  func.func @transform_7(%arg0: i32) -> (i32, i32) {
    %c0_i32 = arith.constant 0 : i32
    %c0_i32_0 = arith.constant 0 : i32
    return %arg0, %c0_i32 : i32, i32
  }
}

</mosaic_0001>

<bundles_post_ra>
// kernel: ann_forward.1
= control target key start
LH: loop header
LB: loop body
LE: loop exit
PB: predicated region body
PF: predicated region fallthrough
CT: control target
= control target key end

     0   :  { %v452_v0 = vmov 0.0   ;;  %vm453_vm0 = vmmov 0   ;;  %vm91_vm1 = vcmask 261120   ;;  %vm332_vm2 = vcmask 64512   ;;  %s590_s1 = inlined_call_operand.vmem [shape: bf16[32,128], index: 1, kind: input, shape index: {}]   ;;  %s591_s3 = inlined_call_operand.vmem [shape: bf16[128,128], index: 3, kind: input, shape index: {}]   ;;  %s592_s0 = inlined_call_operand.vmem [shape: bf16[16,32], index: 0, kind: input, shape index: {}]   ;;  %s593_s5 = inlined_call_operand.vmem [shape: bf16[128,8], index: 5, kind: input, shape index: {}]   ;;  %s594_s2 = inlined_call_operand.vmem [shape: f32[1,128], index: 2, kind: input, shape index: {}]   ;;  %s595_s4 = inlined_call_operand.vmem [shape: f32[1,128], index: 4, kind: input, shape index: {}]   ;;  %s596_s6 = inlined_call_operand.vmem [shape: f32[1,8], index: 6, kind: input, shape index: {}]   ;;  %s597_s7 = inlined_call_operand.vmem [shape: f32[16,8], index: 7, kind: output, shape index: {}]  }
   0x1   :  { %383 = vmatprep.subr.bf16.mxu0 %v452_v0  ;;  %v433_v1 = vld [vmem:[%s590_s1] sm:$0xff]   ;;  %387 = vmatprep.mubr.msk.bf16.mxu0 %vm453_vm0, %v452_v0  ;;  %v434_v2 = vld [vmem:[%s590_s1 + $0x8] sm:$0xff]   ;;  %v438_v6 = vld [vmem:[%s591_s3 + $0x10] sm:$0xff]  }
   0x2   :  { %391 = vmatprep.subr.bf16.mxu1 %v452_v0  ;;  %407 = vmatprep.mubr.msk.bf16.mxu1 %vm453_vm0, %v452_v0  ;;  %v436_v3 = vld [vmem:[%s591_s3] sm:$0xff]   ;;  %v437_v5 = vld [vmem:[%s591_s3 + $0x8] sm:$0xff]   ;;  %v439_v7 = vld [vmem:[%s591_s3 + $0x18] sm:$0xff]  }
   0x3   :  { %384 = vmatpush3.bf16.msra.mxu0 %v433_v1  ;;  %v435_v4 = vld [vmem:[%s592_s0] sm:$0xff]   ;;  %392 = vmatpush3.bf16.msra.mxu1 %v436_v3  ;;  %v441_v9 = vld [vmem:[%s591_s3 + $0x28] sm:$0xff]   ;;  %v442_v10 = vld [vmem:[%s591_s3 + $0x30] sm:$0xff]  }
   0x4   :  { %385 = vmatprep.subr.bf16.mxu0 %v452_v0  ;;  %393 = vmatprep.subr.bf16.mxu1 %v452_v0  ;;  %v440_v8 = vld [vmem:[%s591_s3 + $0x20] sm:$0xff]   ;;  %v443_v11 = vld [vmem:[%s591_s3 + $0x38] sm:$0xff]   ;;  %v445_v13 = vld [vmem:[%s593_s5 + $0x8] sm:$0xff]  }
   0x5   :  { %v444_v12 = vld [vmem:[%s593_s5] sm:$0xff]   ;;  %v446_v14 = vld [vmem:[%s593_s5 + $0x10] sm:$0xff]   ;;  %v447_v15 = vld [vmem:[%s593_s5 + $0x18] sm:$0xff]  }
   0x6   :  { %v448_v16 = vld [vmem:[%s593_s5 + $0x20] sm:$0xff]   ;;  %v449_v17 = vld [vmem:[%s593_s5 + $0x28] sm:$0xff]   ;;  %v450_v28 = vld [vmem:[%s593_s5 + $0x30] sm:$0xff]  }
   0x7   :  { %386 = vmatpush3.bf16.msra.mxu0 %v434_v2  ;;  %394 = vmatpush3.bf16.msra.mxu1 %v437_v5  ;;  %v339_v18 = vld [vmem:[%s594_s2] ss:$0 sm:$0xff]  ;;  %v451_v29 = vld [vmem:[%s593_s5 + $0x38] sm:$0xff]  }
   0x8   :  { %411 = vmatprep.subr.bf16.mxu0 %v452_v0  ;;  %395 = vmatprep.subr.bf16.mxu1 %v452_v0  ;;  %v344_v30 = vld [vmem:[%s595_s4] ss:$0 sm:$0xff] }
   0x9   :  { %v353_v40 = vld [vmem:[%s596_s6] ss:$0 sm:$0xff] }
   0xa   :  { %388 = vmatmul.mubr.msk.bf16.vlgmr.msra.gmra.mrb[0].mxu0 %vm91_vm1, %v435_v4 }
   0xb   :  { %427 = vmatprep.mubr.msk.bf16.mxu0 %vm453_vm0, %v452_v0  ;;  %396 = vmatpush3.bf16.msra.mxu1 %v438_v6 }
   0xc   :  { %397 = vmatprep.subr.bf16.mxu1 %v452_v0  ;;  %412 = vmatpush3.bf16.msra.mxu0 %v444_v12 }
   0xd   :  { %413 = vmatprep.subr.bf16.mxu0 %v452_v0 }
   0xf   :  { %398 = vmatpush3.bf16.msra.mxu1 %v439_v7 }
  0x10   :  { %399 = vmatprep.subr.bf16.mxu1 %v452_v0  ;;  %414 = vmatpush3.bf16.msra.mxu0 %v445_v13 }
  0x11   :  { %415 = vmatprep.subr.bf16.mxu0 %v452_v0 }
  0x13   :  { %400 = vmatpush3.bf16.msra.mxu1 %v440_v8 }
  0x14   :  { %401 = vmatprep.subr.bf16.mxu1 %v452_v0  ;;  %416 = vmatpush3.bf16.msra.mxu0 %v446_v14 }
  0x15   :  { %417 = vmatprep.subr.bf16.mxu0 %v452_v0 }
  0x17   :  { %402 = vmatpush3.bf16.msra.mxu1 %v441_v9 }
  0x18   :  { %403 = vmatprep.subr.bf16.mxu1 %v452_v0  ;;  %418 = vmatpush3.bf16.msra.mxu0 %v447_v15 }
  0x19   :  { %419 = vmatprep.subr.bf16.mxu0 %v452_v0 }
  0x1b   :  { %404 = vmatpush3.bf16.msra.mxu1 %v442_v10 }
  0x1c   :  { %405 = vmatprep.subr.bf16.mxu1 %v452_v0  ;;  %420 = vmatpush3.bf16.msra.mxu0 %v448_v16 }
  0x1d   :  { %421 = vmatprep.subr.bf16.mxu0 %v452_v0 }
  0x1f   :  { %406 = vmatpush3.bf16.msra.mxu1 %v443_v11 }
  0x20   :  { %422 = vmatpush3.bf16.msra.mxu0 %v449_v17 }
  0x21   :  { %423 = vmatprep.subr.bf16.mxu0 %v452_v0 }
  0x24   :  { %424 = vmatpush3.bf16.msra.mxu0 %v450_v28 }
  0x25   :  { %425 = vmatprep.subr.bf16.mxu0 %v452_v0 }
  0x28   :  { %426 = vmatpush3.bf16.msra.mxu0 %v451_v29 }
  0xdd   :  { %v129_v19 = vpop.f32.mrb[0].mxu0 }
  0xde   :  { %v130_v20 = vadd.f32 %v339_v18, %v129_v19  ;;  %v389_v21 = vpop.f32.mrb[1].mxu0 }
  0xdf   :  { %v132_v22 = vpop.f32.mrb[2].mxu0 }
  0xe0   :  { %v133_v23 = vadd.f32 %v339_v18, %v132_v22  ;;  %v390_v24 = vpop.f32.mrb[3].mxu0  ;;  %v136_v25 = vmax.f32 %v130_v20, 0.0 }
  0xe2   :  { %v137_v26 = vmax.f32 %v133_v23, 0.0 }
  0xe4   :  { %v138_v27 = vpack.c.bf16 %v137_v26, %v136_v25 }
  0xe6   :  { %408 = vmatmul.mubr.bf16.vlgmr.msra.gmra.mrb[0].mxu1 %v138_v27 }
 0x1b9   :  { %v227_v31 = vpop.f32.mrb[0].mxu1 }
 0x1ba   :  { %v228_v32 = vadd.f32 %v344_v30, %v227_v31  ;;  %v409_v33 = vpop.f32.mrb[1].mxu1 }
 0x1bb   :  { %v230_v34 = vpop.f32.mrb[2].mxu1 }
 0x1bc   :  { %v231_v35 = vadd.f32 %v344_v30, %v230_v34  ;;  %v410_v36 = vpop.f32.mrb[3].mxu1  ;;  %v234_v37 = vmax.f32 %v228_v32, 0.0 }
 0x1be   :  { %v235_v38 = vmax.f32 %v231_v35, 0.0 }
 0x1c0   :  { %v236_v39 = vpack.c.bf16 %v235_v38, %v234_v37 }
 0x1c2   :  { %428 = vmatmul.mubr.bf16.vlgmr.msra.gmra.mrb[4].mxu0 %v236_v39 }
 0x295   :  { %v325_v41 = vpop.f32.mrb[4].mxu0 }
 0x296   :  { %v326_v42 = vadd.f32 %v353_v40, %v325_v41  ;;  %v429_v43 = vpop.f32.mrb[5].mxu0 }
 0x297   :  { %v328_v44 = vpop.f32.mrb[6].mxu0 }
 0x298   :  { %333 = vst.msk [vmem:[%s597_s7] sm:$0xff] %vm332_vm2, %v326_v42  ;;  %v329_v45 = vadd.f32 %v353_v40, %v328_v44  ;;  %v430_v46 = vpop.f32.mrb[7].mxu0 }
 0x29a   :  { %334 = vst.msk [vmem:[%s597_s7 + $0x8] sm:$0xff] %vm332_vm2, %v329_v45 }

</bundles_post_ra>
